<compile_context>
chip_gen: v7x
topology: tpu7x:2x2x1
jax: 0.10.0
libtpu: 0.0.40
codegen_flags: <defaults>
</compile_context>

<pallas_src>
import functools

import jax
import jax.numpy as jnp
from jax.experimental import pallas as pl
from jax.experimental.pallas import tpu as pltpu


def _decoder_kernel(x_ref, w1_ref, b1_ref, w2_ref, b2_ref, o_ref):
    # x_ref : (TB, D)  bf16   (D = input_dim + y_dim; concat done in wrapper)
    # w1_ref: (D, H)   bf16   (constant index_map -> resident in VMEM)
    # b1_ref: (1, H)   f32
    # w2_ref: (H, O)   bf16
    # b2_ref: (1, O)   f32
    # o_ref : (TB, O)  f32
    h = jnp.dot(x_ref[...], w1_ref[...], preferred_element_type=jnp.float32)
    h = h + b1_ref[...]
    # LeakyReLU(negative_slope=0.2), in f32.
    h = jnp.where(h > 0, h, 0.2 * h)

    o = jnp.dot(h.astype(w2_ref.dtype), w2_ref[...], preferred_element_type=jnp.float32)
    o = o + b2_ref[...]

    # Numerically stable exact sigmoid:
    #   e = exp(-|o|);  sigmoid(o) = 1/(1+e) if o >= 0 else e/(1+e)
    e = jnp.exp(-jnp.abs(o))
    o_ref[...] = (jnp.where(o >= 0, 1.0, e) / (1.0 + e)).astype(o_ref.dtype)


def _round_up(x, m):
    return (x + m - 1) // m * m


def _pick_batch_tile(batch):
    """Batch tile selection.

    - Cap at 1024 rows: big enough to amortize the ~0.35us fixed per-step
      overhead, small enough (~4 MiB footprint) for v5e's 16 MiB scoped VMEM.
    - For medium/large batches below 2*cap, force >= 2 tiles so the "parallel"
      grid axis can be sharded across both TensorCores on v7x.
    - Always a multiple of 8 (sublane constraint); the last block may be
      partial (OOB writes are clipped by Pallas).
    """
    cap = 1024
    if batch >= 2 * cap:
        return cap
    if batch >= 256:
        return _round_up(pl.cdiv(batch, 2), 8)
    return _round_up(batch, 8)


def prepare_decoder_params(w1, b1, w2, b2):
    """One-time parameter preparation, hoisted out of the per-call hot path.

    w1: (input_dim + y_dim, 512), b1: (512,)
    w2: (512, output_dim),        b2: (output_dim,)
    (weights stored pre-transposed as (in, out); identical to torch x @ W.T + b)
    """
    return (
        w1.astype(jnp.bfloat16),                # (D, H) bf16 MXU operand
        b1.reshape(1, -1).astype(jnp.float32),  # (1, H) f32
        w2.astype(jnp.bfloat16),                # (H, O) bf16 MXU operand
        b2.reshape(1, -1).astype(jnp.float32),  # (1, O) f32
    )


@jax.jit
def task_irrelevant_decoder_forward(z, y, params):
    """z: (B, input_dim) f32, y: (B, y_dim) f32 -> (B, output_dim) f32."""
    w1_b, b1_2d, w2_b, b2_2d = params
    B = z.shape[0]
    D, H = w1_b.shape
    O = w2_b.shape[1]
    assert z.shape[1] + y.shape[1] == D

    # Fold the concat and the bf16 cast into a single tiny pass (B*D*2 bytes);
    # layer-1 then needs only one fused MXU dot inside the kernel.
    x = jnp.concatenate([z, y], axis=1).astype(jnp.bfloat16)

    TB = _pick_batch_tile(B)
    grid = (pl.cdiv(B, TB),)

    # NOTE: the last grid block may be partial. OOB rows may read undefined
    # data (and produce inf/NaN through exp), but all math here is strictly
    # row-wise and OOB writes are clipped, so valid rows are unaffected.
    # Do not add cross-row reductions to this kernel without re-padding B.
    out = pl.pallas_call(
        _decoder_kernel,
        out_shape=jax.ShapeDtypeStruct((B, O), jnp.float32),
        grid_spec=pltpu.PrefetchScalarGridSpec(
            num_scalar_prefetch=0,
            grid=grid,
            in_specs=[
                pl.BlockSpec((TB, D), lambda i: (i, 0)),  # batch tile of inputs
                pl.BlockSpec((D, H), lambda i: (0, 0)),   # resident weights
                pl.BlockSpec((1, H), lambda i: (0, 0)),
                pl.BlockSpec((H, O), lambda i: (0, 0)),
                pl.BlockSpec((1, O), lambda i: (0, 0)),
            ],
            out_specs=pl.BlockSpec((TB, O), lambda i: (i, 0)),
        ),
        compiler_params=pltpu.CompilerParams(
            # Batch tiles are independent -> shard across both TCs on v7x.
            dimension_semantics=("parallel",),
        ),
    )(x, w1_b, b1_2d, w2_b, b2_2d)

    return out


def _reference_forward(z, y, w1, b1, w2, b2):
    combined = jnp.concatenate([z, y], axis=1)
    h = combined @ w1 + b1
    h = jnp.where(h > 0, h, 0.2 * h)
    o = h @ w2 + b2
    return jax.nn.sigmoid(o)


if __name__ == "__main__":
    # Small shapes consistent with the module's constructor.
    batch = 8
    input_dim = 32     # z dim
    y_dim = 16
    output_dim = 64
    hidden = 512
    num_classes = 10

    key = jax.random.PRNGKey(0)
    kz, ky, ke, k1, kb1, k2, kb2 = jax.random.split(key, 7)

    z = jax.random.normal(kz, (batch, input_dim), dtype=jnp.float32)
    y = jax.random.normal(ky, (batch, y_dim), dtype=jnp.float32)

    # class_embeddings parameter exists in __init__ but forward never reads it.
    class_embeddings = jax.random.normal(ke, (num_classes, y_dim), dtype=jnp.float32)  # noqa: F841

    # Deterministic parameter init (Kaiming-uniform-ish scale), stored as (in, out).
    D = input_dim + y_dim
    lim1 = 1.0 / jnp.sqrt(D)
    w1 = jax.random.uniform(k1, (D, hidden), minval=-lim1, maxval=lim1, dtype=jnp.float32)
    b1 = jax.random.uniform(kb1, (hidden,), minval=-lim1, maxval=lim1, dtype=jnp.float32)
    lim2 = 1.0 / jnp.sqrt(hidden)
    w2 = jax.random.uniform(k2, (hidden, output_dim), minval=-lim2, maxval=lim2, dtype=jnp.float32)
    b2 = jax.random.uniform(kb2, (output_dim,), minval=-lim2, maxval=lim2, dtype=jnp.float32)

    params = prepare_decoder_params(w1, b1, w2, b2)   # one-time prep, hoisted
    out = task_irrelevant_decoder_forward(z, y, params)
    out = jax.block_until_ready(out)

    ref = _reference_forward(z, y, w1, b1, w2, b2)
    assert out.shape == (batch, output_dim)
    # bf16 matmul operands -> loosened tolerance vs f32 reference.
    assert jnp.allclose(out, ref, atol=1e-2, rtol=1e-2), "mismatch vs reference"

    print("KERNEL_OK")
</pallas_src>

<mosaic_0001>
module attributes {stable_mosaic.version = 11 : i64} {
  func.func @_decoder_kernel(%arg0: i32, %arg1: memref<8x48xbf16, #tpu.memory_space<vmem>>, %arg2: memref<48x512xbf16, #tpu.memory_space<vmem>>, %arg3: memref<1x512xf32, #tpu.memory_space<vmem>>, %arg4: memref<512x64xbf16, #tpu.memory_space<vmem>>, %arg5: memref<1x64xf32, #tpu.memory_space<vmem>>, %arg6: memref<8x64xf32, #tpu.memory_space<vmem>>) attributes {dimension_semantics = [#tpu.dimension_semantics<parallel>], iteration_bounds = array<i64: 1>, scalar_prefetch = 0 : i64, scratch_operands = 0 : i64, tpu.core_type = #tpu.core_type<tc>, window_params = [{transform_indices = @transform_0, window_bounds = array<i64: 8, 48>}, {pipeline_mode = #tpu.pipeline_mode<synchronous>, transform_indices = @transform_1, window_bounds = array<i64: 48, 512>}, {pipeline_mode = #tpu.pipeline_mode<synchronous>, transform_indices = @transform_2, window_bounds = array<i64: 1, 512>}, {pipeline_mode = #tpu.pipeline_mode<synchronous>, transform_indices = @transform_3, window_bounds = array<i64: 512, 64>}, {pipeline_mode = #tpu.pipeline_mode<synchronous>, transform_indices = @transform_4, window_bounds = array<i64: 1, 64>}, {transform_indices = @transform_5, window_bounds = array<i64: 8, 64>}]} {
    %c0 = arith.constant 0 : index
    %c0_0 = arith.constant 0 : index
    %0 = vector.load %arg1[%c0, %c0_0] : memref<8x48xbf16, #tpu.memory_space<vmem>>, vector<8x48xbf16>
    %c0_1 = arith.constant 0 : index
    %c0_2 = arith.constant 0 : index
    %1 = vector.load %arg2[%c0_1, %c0_2] : memref<48x512xbf16, #tpu.memory_space<vmem>>, vector<48x512xbf16>
    %cst = arith.constant dense<0.000000e+00> : vector<8x512xf32>
    %2 = tpu.matmul %0, %1, %cst {dimension_numbers = #tpu.dot_dimension_numbers<[1], [0], [0], [1], [0, 0, 1, 1], [], []>} : vector<8x48xbf16>, vector<48x512xbf16>, vector<8x512xf32> -> vector<8x512xf32>
    %c0_3 = arith.constant 0 : index
    %c0_4 = arith.constant 0 : index
    %3 = vector.load %arg3[%c0_3, %c0_4] : memref<1x512xf32, #tpu.memory_space<vmem>>, vector<1x512xf32>
    %4 = vector.broadcast %3 : vector<1x512xf32> to vector<8x512xf32>
    %5 = arith.addf %2, %4 : vector<8x512xf32>
    %cst_5 = arith.constant 0.000000e+00 : f32
    %6 = vector.broadcast %cst_5 : f32 to vector<8x512xf32>
    %7 = arith.cmpf ogt, %5, %6 : vector<8x512xf32>
    %cst_6 = arith.constant 2.000000e-01 : f32
    %8 = vector.broadcast %cst_6 : f32 to vector<8x512xf32>
    %9 = arith.mulf %8, %5 : vector<8x512xf32>
    %10 = arith.select %7, %5, %9 : vector<8x512xi1>, vector<8x512xf32>
    %11 = arith.truncf %10 : vector<8x512xf32> to vector<8x512xbf16>
    %c0_7 = arith.constant 0 : index
    %c0_8 = arith.constant 0 : index
    %12 = vector.load %arg4[%c0_7, %c0_8] : memref<512x64xbf16, #tpu.memory_space<vmem>>, vector<512x64xbf16>
    %cst_9 = arith.constant dense<0.000000e+00> : vector<8x64xf32>
    %13 = tpu.matmul %11, %12, %cst_9 {dimension_numbers = #tpu.dot_dimension_numbers<[1], [0], [0], [1], [0, 0, 1, 1], [], []>} : vector<8x512xbf16>, vector<512x64xbf16>, vector<8x64xf32> -> vector<8x64xf32>
    %c0_10 = arith.constant 0 : index
    %c0_11 = arith.constant 0 : index
    %14 = vector.load %arg5[%c0_10, %c0_11] : memref<1x64xf32, #tpu.memory_space<vmem>>, vector<1x64xf32>
    %15 = vector.broadcast %14 : vector<1x64xf32> to vector<8x64xf32>
    %16 = arith.addf %13, %15 : vector<8x64xf32>
    %17 = math.absf %16 : vector<8x64xf32>
    %cst_12 = arith.constant 0.000000e+00 : f32
    %18 = vector.broadcast %cst_12 : f32 to vector<8x64xf32>
    %19 = arith.subf %18, %17 : vector<8x64xf32>
    %20 = math.exp %19 : vector<8x64xf32>
    %cst_13 = arith.constant 0.000000e+00 : f32
    %21 = vector.broadcast %cst_13 : f32 to vector<8x64xf32>
    %22 = arith.cmpf oge, %16, %21 : vector<8x64xf32>
    %cst_14 = arith.constant 1.000000e+00 : f32
    %23 = vector.broadcast %cst_14 : f32 to vector<8x64xf32>
    %24 = arith.select %22, %23, %20 : vector<8x64xi1>, vector<8x64xf32>
    %cst_15 = arith.constant 1.000000e+00 : f32
    %25 = vector.broadcast %cst_15 : f32 to vector<8x64xf32>
    %26 = arith.addf %25, %20 : vector<8x64xf32>
    %27 = arith.divf %24, %26 : vector<8x64xf32>
    %c0_16 = arith.constant 0 : index
    %c0_17 = arith.constant 0 : index
    %28 = vector.load %arg6[%c0_16, %c0_17] : memref<8x64xf32, #tpu.memory_space<vmem>>, vector<8x64xf32>
    tpu.vector_store %arg6[%c0_16, %c0_17], %27 {strides = array<i32>} : memref<8x64xf32, #tpu.memory_space<vmem>>, vector<8x64xf32>,
    return
  }
  func.func @transform_0(%arg0: i32) -> (i32, i32) {
    %c0_i32 = arith.constant 0 : i32
    %c0_i32_0 = arith.constant 0 : i32
    return %arg0, %c0_i32 : i32, i32
  }
  func.func @transform_1(%arg0: i32) -> (i32, i32) {
    %c0_i32 = arith.constant 0 : i32
    %c0_i32_0 = arith.constant 0 : i32
    %c0_i32_1 = arith.constant 0 : i32
    return %c0_i32, %c0_i32_0 : i32, i32
  }
  func.func @transform_2(%arg0: i32) -> (i32, i32) {
    %c0_i32 = arith.constant 0 : i32
    %c0_i32_0 = arith.constant 0 : i32
    %c0_i32_1 = arith.constant 0 : i32
    return %c0_i32, %c0_i32_0 : i32, i32
  }
  func.func @transform_3(%arg0: i32) -> (i32, i32) {
    %c0_i32 = arith.constant 0 : i32
    %c0_i32_0 = arith.constant 0 : i32
    %c0_i32_1 = arith.constant 0 : i32
    return %c0_i32, %c0_i32_0 : i32, i32
  }
  func.func @transform_4(%arg0: i32) -> (i32, i32) {
    %c0_i32 = arith.constant 0 : i32
    %c0_i32_0 = arith.constant 0 : i32
    %c0_i32_1 = arith.constant 0 : i32
    return %c0_i32, %c0_i32_0 : i32, i32
  }
  func.func @transform_5(%arg0: i32) -> (i32, i32) {
    %c0_i32 = arith.constant 0 : i32
    %c0_i32_0 = arith.constant 0 : i32
    return %arg0, %c0_i32 : i32, i32
  }
}

</mosaic_0001>

<bundles_post_ra>
// kernel: task_irrelevant_decoder_forward.1
= control target key start
LH: loop header
LB: loop body
LE: loop exit
PB: predicated region body
PF: predicated region fallthrough
CT: control target
= control target key end

     0   :  { %v758_v2 = vmov 0   ;;  %vm117_vm0 = vcmask 392192   ;;  %s943_s0 = inlined_call_operand.vmem [shape: bf16[8,48], index: 0, kind: input, shape index: {}]   ;;  %s944_s1 = inlined_call_operand.vmem [shape: bf16[48,512], index: 1, kind: input, shape index: {}]   ;;  %s945_s2 = inlined_call_operand.vmem [shape: f32[1,512], index: 2, kind: input, shape index: {}]   ;;  %s946_s3 = inlined_call_operand.vmem [shape: bf16[512,64], index: 3, kind: input, shape index: {}]   ;;  %s947_s4 = inlined_call_operand.vmem [shape: f32[1,64], index: 4, kind: input, shape index: {}]   ;;  %s948_s5 = inlined_call_operand.hbm [shape: f32[8,64], index: 5, kind: output, shape index: {}]  }
   0x1   :  { %v680_v0 = vld [vmem:[%s944_s1 + $0x4] ss:$16 sps:$4 sm:$0xff]   ;;  %v682_v1 = vld [vmem:[%s944_s1 + $0xc] ss:$16 sps:$4 sm:$0xff]   ;;  %153 = vmatprep.mubr.bf16.mxu0 %v758_v2  ;;  %194 = vmatprep.mubr.bf16.mxu1 %v758_v2  ;;  %v684_v3 = vld [vmem:[%s944_s1] ss:$16 sps:$4 sm:$0xff]  }
   0x2   :  { %121 = vmatprep.subr.bf16.mxu0 %v680_v0  ;;  %v685_v4 = vld [vmem:[%s944_s1 + $0x8] ss:$16 sps:$4 sm:$0xff]   ;;  %162 = vmatprep.subr.bf16.mxu1 %v682_v1  ;;  %v686_v5 = vld [vmem:[%s944_s1 + $0x24] ss:$16 sps:$4 sm:$0xff]   ;;  %v688_v6 = vld [vmem:[%s944_s1 + $0x2c] ss:$16 sps:$4 sm:$0xff]  }
   0x3   :  { %122 = vmatpush1.bf16.msra.mxu0 %v684_v3  ;;  %163 = vmatpush1.bf16.msra.mxu1 %v685_v4  ;;  %v690_v7 = vld [vmem:[%s944_s1 + $0x20] ss:$16 sps:$4 sm:$0xff]   ;;  %v691_v8 = vld [vmem:[%s944_s1 + $0x28] ss:$16 sps:$4 sm:$0xff]   ;;  %v692_v9 = vld [vmem:[%s944_s1 + $0x44] ss:$16 sps:$4 sm:$0xff]  }
   0x4   :  { %123 = vmatprep.subr.bf16.mxu0 %v686_v5  ;;  %164 = vmatprep.subr.bf16.mxu1 %v688_v6  ;;  %v694_v10 = vld [vmem:[%s944_s1 + $0x4c] ss:$16 sps:$4 sm:$0xff]   ;;  %v696_v11 = vld [vmem:[%s944_s1 + $0x40] ss:$16 sps:$4 sm:$0xff]   ;;  %v697_v12 = vld [vmem:[%s944_s1 + $0x48] ss:$16 sps:$4 sm:$0xff]  }
   0x5   :  { %v698_v13 = vld [vmem:[%s946_s3 + $0x40] sm:$0xff]   ;;  %v702_v18 = vld [vmem:[%s946_s3 + $0x48] sm:$0xff]   ;;  %v706_v22 = vld [vmem:[%s946_s3 + $0x50] sm:$0xff]  }
   0x6   :  { %v22_v14 = vld [vmem:[%s943_s0] sm:$0xf]  ;;  %v703_v19 = vld [vmem:[%s946_s3 + $0xc8] sm:$0xff]   ;;  %v707_v23 = vld [vmem:[%s946_s3 + $0xd0] sm:$0xff]  }
   0x7   :  { %124 = vmatpush1.bf16.msra.mxu0 %v690_v7  ;;  %165 = vmatpush1.bf16.msra.mxu1 %v691_v8  ;;  %v699_v15 = vld [vmem:[%s946_s3 + $0xc0] sm:$0xff]   ;;  %v704_v20 = vld [vmem:[%s946_s3 + $0x8] sm:$0xff]   ;;  %v708_v24 = vld [vmem:[%s946_s3 + $0x10] sm:$0xff]  }
   0x8   :  { %125 = vmatprep.subr.bf16.mxu0 %v692_v9  ;;  %166 = vmatprep.subr.bf16.mxu1 %v694_v10  ;;  %v700_v16 = vld [vmem:[%s946_s3] sm:$0xff]   ;;  %v705_v21 = vld [vmem:[%s946_s3 + $0x88] sm:$0xff]   ;;  %v709_v25 = vld [vmem:[%s946_s3 + $0x90] sm:$0xff]  }
   0x9   :  { %v701_v17 = vld [vmem:[%s946_s3 + $0x80] sm:$0xff]   ;;  %v710_v26 = vld [vmem:[%s946_s3 + $0x58] sm:$0xff]   ;;  %v718_v34 = vld [vmem:[%s946_s3 + $0x68] sm:$0xff]  }
   0xa   :  { %v711_v27 = vld [vmem:[%s946_s3 + $0xd8] sm:$0xff]   ;;  %v714_v30 = vld [vmem:[%s946_s3 + $0x60] sm:$0xff]   ;;  %v719_v35 = vld [vmem:[%s946_s3 + $0xe8] sm:$0xff]  }
   0xb   :  { %126 = vmatpush1.bf16.msra.mxu0 %v696_v11  ;;  %167 = vmatpush1.bf16.msra.mxu1 %v697_v12  ;;  %v712_v28 = vld [vmem:[%s946_s3 + $0x18] sm:$0xff]   ;;  %v715_v31 = vld [vmem:[%s946_s3 + $0xe0] sm:$0xff]   ;;  %v720_v36 = vld [vmem:[%s946_s3 + $0x28] sm:$0xff]  }
   0xc   :  { %634 = vmatprep.subr.bf16.mxu0 %v698_v13  ;;  %656 = vmatprep.subr.bf16.mxu1 %v699_v15  ;;  %v713_v29 = vld [vmem:[%s946_s3 + $0x98] sm:$0xff]   ;;  %v716_v32 = vld [vmem:[%s946_s3 + $0x20] sm:$0xff]   ;;  %v721_v37 = vld [vmem:[%s946_s3 + $0xa8] sm:$0xff]  }
   0xd   :  { %v717_v33 = vld [vmem:[%s946_s3 + $0xa0] sm:$0xff]  }
   0xe   :  { %599 = vmatmul.mubr.msk.bf16.vlgmr.msra.gmra.mrb[0].mxu0 %vm117_vm0, %v22_v14  ;;  %600 = vmatmul.mubr.msk.bf16.vlgmr.msra.gmra.mrb[0].mxu1 %vm117_vm0, %v22_v14 }
   0xf   :  { %635 = vmatpush3.bf16.msra.mxu0 %v700_v16  ;;  %657 = vmatpush3.bf16.msra.mxu1 %v701_v17 }
  0x10   :  { %636 = vmatprep.subr.bf16.mxu0 %v702_v18  ;;  %658 = vmatprep.subr.bf16.mxu1 %v703_v19 }
  0x13   :  { %637 = vmatpush3.bf16.msra.mxu0 %v704_v20  ;;  %659 = vmatpush3.bf16.msra.mxu1 %v705_v21 }
  0x14   :  { %638 = vmatprep.subr.bf16.mxu0 %v706_v22  ;;  %660 = vmatprep.subr.bf16.mxu1 %v707_v23 }
  0x17   :  { %639 = vmatpush3.bf16.msra.mxu0 %v708_v24  ;;  %661 = vmatpush3.bf16.msra.mxu1 %v709_v25 }
  0x18   :  { %640 = vmatprep.subr.bf16.mxu0 %v710_v26  ;;  %662 = vmatprep.subr.bf16.mxu1 %v711_v27 }
  0x1b   :  { %641 = vmatpush3.bf16.msra.mxu0 %v712_v28  ;;  %663 = vmatpush3.bf16.msra.mxu1 %v713_v29 }
  0x1c   :  { %642 = vmatprep.subr.bf16.mxu0 %v714_v30  ;;  %664 = vmatprep.subr.bf16.mxu1 %v715_v31 }
  0x1f   :  { %643 = vmatpush3.bf16.msra.mxu0 %v716_v32  ;;  %665 = vmatpush3.bf16.msra.mxu1 %v717_v33 }
  0x20   :  { %644 = vmatprep.subr.bf16.mxu0 %v718_v34  ;;  %666 = vmatprep.subr.bf16.mxu1 %v719_v35 }
  0x23   :  { %645 = vmatpush3.bf16.msra.mxu0 %v720_v36  ;;  %667 = vmatpush3.bf16.msra.mxu1 %v721_v37 }
  0x24   :  { %10 = vsyncpa [#allocation3], 0  ;;  %v722_v38 = vld [vmem:[%s946_s3 + $0x70] sm:$0xff]   ;;  %v726_v42 = vld [vmem:[%s946_s3 + $0x78] sm:$0xff]   ;;  %v37_v46 = vlaneseq  ;;  %s759_s29 = smov [#allocation2]   ;;  %vm571_vm6 = vcmask 523264  }
  0x25   :  { %v723_v39 = vld [vmem:[%s946_s3 + $0xf0] sm:$0xff]   ;;  %646 = vmatprep.subr.bf16.mxu0 %v722_v38  ;;  %v727_v43 = vld [vmem:[%s946_s3 + $0xf8] sm:$0xff]   ;;  %v35_v50 = vld [vmem:[%s945_s2] sm:$0xf]  ;;  %s579_s30 = sshll.u32 %s759_s29, 4  ;;  %s580_s30 = int_to_ptr.vmem [resolvable:$true] %s579_s30 }
  0x26   :  { %668 = vmatprep.subr.bf16.mxu1 %v723_v39  ;;  %v724_v40 = vld [vmem:[%s946_s3 + $0x30] sm:$0xff]   ;;  %v728_v44 = vld [vmem:[%s946_s3 + $0x38] sm:$0xff]   ;;  %v38_v47 = vshrl.u32 %v37_v46, 7  ;;  %v601_v19 = vld [vmem:[%s947_s4] ss:$0 sm:$0xff]  ;;  %s734_s4 = scalar_lea.vmem %s580_s30, 128  ;;  %p739_p1 = scmp.lt.s32.totalorder %s580_s30, %s580_s30 }
  0x27   :  { %v725_v41 = vld [vmem:[%s946_s3 + $0xb0] sm:$0xff]   ;;  %647 = vmatpush3.bf16.msra.mxu0 %v724_v40  ;;  %v729_v45 = vld [vmem:[%s946_s3 + $0xb8] sm:$0xff]   ;;  %p735_p0 = scmp.ne.s32.totalorder %s580_s30, %s734_s4  ;;  %p740_p2 = scmp.lt.s32.totalorder %s734_s4, %s734_s4 }
  0x28   :  { %669 = vmatpush3.bf16.msra.mxu1 %v725_v41  ;;  %648 = vmatprep.subr.bf16.mxu0 %v726_v42  ;;  %v39_v48 = vsub.s32 0, %v38_v47  ;;  %v47_v49 = vsub.s32 2, %v38_v47  ;;  %v43_v51 = vsub.s32 1, %v38_v47  ;;  %v51_v52 = vsub.s32 3, %v38_v47 }
  0x29   :  { %670 = vmatprep.subr.bf16.mxu1 %v727_v43  ;;  %p741_p3 = por %p740_p2, %p739_p1 }
  0x2a   :  { %v40_v53 = vrot.slane %v35_v50, %v39_v48  ;;  %v48_v54 = vrot.slane %v35_v50, %v47_v49  ;;  %v44_v55 = vrot.slane %v35_v50, %v43_v51  ;;  %v52_v56 = vrot.slane %v35_v50, %v51_v52 }
  0x2b   :  { %649 = vmatpush3.bf16.msra.mxu0 %v728_v44  ;;  %p742_p4 = pnand %p741_p3, %p735_p0 }
  0x2c   :  { %671 = vmatpush3.bf16.msra.mxu1 %v729_v45 }
  0xe1   :  { %v155_v57 = vpop.f32.mrb[0].mxu0  ;;  %v196_v58 = vpop.f32.mrb[0].mxu1 }
  0xe2   :  { %v156_v59 = vadd.f32 %v155_v57, %v40_v53  ;;  %v197_v60 = vadd.f32 %v196_v58, %v48_v54  ;;  %v157_v61 = vpop.f32.mrb[1].mxu0  ;;  %v198_v62 = vpop.f32.mrb[1].mxu1 }
  0xe3   :  { %v158_v63 = vadd.f32 %v157_v61, %v44_v55  ;;  %v199_v0 = vadd.f32 %v198_v62, %v52_v56  ;;  %v159_v1 = vpop.f32.mrb[2].mxu0  ;;  %v200_v2 = vpop.f32.mrb[2].mxu1 }
  0xe4   :  { %vm203_vm1 = vcmp.gt.f32.partialorder %v156_v59, 0.0  ;;  %v207_v3 = vmul.f32 0.2, %v156_v59  ;;  %vm205_vm2 = vcmp.gt.f32.partialorder %v197_v60, 0.0  ;;  %v209_v4 = vmul.f32 0.2, %v197_v60 }
  0xe5   :  { %vm204_vm3 = vcmp.gt.f32.partialorder %v158_v63, 0.0  ;;  %v208_v5 = vmul.f32 0.2, %v158_v63  ;;  %vm206_vm4 = vcmp.gt.f32.partialorder %v199_v0, 0.0  ;;  %v210_v6 = vmul.f32 0.2, %v199_v0 }
  0xe6   :  { %v211_v7 = vsel %vm203_vm1, %v156_v59, %v207_v3  ;;  %v213_v8 = vsel %vm205_vm2, %v197_v60, %v209_v4  ;;  %v160_v9 = vpop.f32.mrb[3].mxu0  ;;  %v201_v10 = vpop.f32.mrb[3].mxu1 }
  0xe7   :  { %v212_v11 = vsel %vm204_vm3, %v158_v63, %v208_v5  ;;  %v214_v12 = vsel %vm206_vm4, %v199_v0, %v210_v6  ;;  %v215_v15 = vpack.c.bf16 %v211_v7, %v211_v7  ;;  %v217_v16 = vpack.c.bf16 %v213_v8, %v213_v8 }
  0xe8   :  { %v216_v13 = vpack.c.bf16 %v212_v11, %v212_v11  ;;  %v218_v14 = vpack.c.bf16 %v214_v12, %v214_v12 }
  0xea   :  { %514 = vmatprep.mubr.bf16.mxu0 %v216_v13  ;;  %554 = vmatprep.mubr.bf16.mxu1 %v218_v14 }
  0xeb   :  { %515 = vmatmul.mubr.bf16.vlgmr.msra.gmra.mrb[4].mxu0 %v215_v15  ;;  %555 = vmatmul.mubr.bf16.vlgmr.msra.gmra.mrb[4].mxu1 %v217_v16 }
 0x1be   :  { %v650_v17 = vpop.f32.mrb[4].mxu0  ;;  %v672_v18 = vpop.f32.mrb[4].mxu1 }
 0x1bf   :  { %v651_v20 = vpop.f32.mrb[5].mxu0  ;;  %v673_v21 = vpop.f32.mrb[5].mxu1 }
 0x1c0   :  { %v652_v22 = vadd.f32 %v651_v20, %v650_v17  ;;  %v674_v23 = vadd.f32 %v673_v21, %v672_v18  ;;  %v653_v24 = vpop.f32.mrb[6].mxu0  ;;  %v675_v25 = vpop.f32.mrb[6].mxu1 }
 0x1c1   :  { %v654_v26 = vpop.f32.mrb[7].mxu0  ;;  %v676_v27 = vpop.f32.mrb[7].mxu1 }
 0x1c2   :  { %v517_v28 = vadd.f32 %v652_v22, %v601_v19 }
 0x1c4   :  { %v557_v29 = vadd.f32 %v674_v23, %v517_v28 }
 0x1c6   :  { %v562_v30 = vand.u32 2147483647, %v557_v29  ;;  %vm566_vm5 = vcmp.ge.f32.partialorder %v557_v29, 0.0 }
 0x1c8   :  { %v563_v31 = vsub.f32 0.0, %v562_v30 }
 0x1ca   :  { %v564_v32 = vmul.f32 1.442695, %v563_v31 }
 0x1cc   :  { %730 = vpow2.f32 %v564_v32 }
 0x1d6   :  { %v731_v33 = vpop.eup %730 }
 0x1d7   :  { %v568_v34 = vadd.f32 1.0, %v731_v33  ;;  %v567_v36 = vsel %vm566_vm5, 1.0, %v731_v33 }
 0x1d9   :  { %732 = vrcp.f32 %v568_v34 }
 0x1e3   :  { %v733_v35 = vpop.eup %732 }
 0x1e4   :  { %v570_v37 = vmul.f32 %v733_v35, %v567_v36 }
 0x1e6   :  { %572 = vst.msk [vmem:[#allocation2] sm:$0xff] %vm571_vm6, %v570_v37 }
 0x1e7   :  { %745 = shalt.err (!%p742_p4)
}
 0x1e8   :  { %s746_s8 = scalar_lea.hbm %s948_s5, 128 }
 0x1e9   :  { %p747_p5 = scmp.ne.s32.totalorder %s948_s5, %s746_s8  ;;  %p750_p6 = scmp.lt.u32.totalorder %s746_s8, %s948_s5 }
 0x1eb   :  { %p752_p7 = pnand %p750_p6, %p747_p5 }
 0x1ed   :  { %755 = shalt.err (!%p752_p7)
}
 0x1ee   :  { %582 = dma.vmem_to_hbm [thread:$0]  %s580_s30, 128, %s948_s5, [#allocation3]  }
 0x1ef   :  { %756 = dma.done.wait [#allocation3], 128  }
 0x1f0   :  { %757 = vsyncadd [#allocation3], 4294967168 }
 0x1f1   :  { %586 = vsyncpa [#allocation3], 1 }

</bundles_post_ra>
